<compile_context>
chip_gen: v5e
topology: v5e:2x2
jax: 0.10.0
libtpu: 0.0.40
codegen_flags: <defaults>
</compile_context>

<pallas_src>
import jax
import jax.numpy as jnp
from jax.experimental import pallas as pl
from jax.experimental.pallas import tpu as pltpu

BN_EPS = 1e-5
_LANE = 128
_SUBLANE_BF16 = 16                      # bf16 sublane packing granularity
_STATS_ROWS = 8                         # one (8, cout_pad) stats block per M tile
_VMEM_LIMIT = 48 * 1024 * 1024          # ceiling safe on v7x (64 MiB phys); fine on v5e/v6e
_VMEM_BUDGET = 40 * 1024 * 1024         # target live footprint when picking tiles


def _round_up(x, m):
    return (x + m - 1) // m * m


# ---------------------------------------------------------------------------
# Pass 1: tiled conv matmul (bf16 MXU inputs, f32 accumulation) + per-M-tile
# partial batch statistics.  Grid = (M tiles ["parallel"], K tiles ["arbitrary"]).
# ---------------------------------------------------------------------------
def _conv_stats_kernel(p_ref, w_ref, conv_ref, stats_ref, acc_ref):
    k = pl.program_id(1)

    @pl.when(k == 0)
    def _init():
        acc_ref[...] = jnp.zeros_like(acc_ref)

    acc_ref[...] += jnp.dot(p_ref[...], w_ref[...],
                            preferred_element_type=jnp.float32)

    @pl.when(k == pl.num_programs(1) - 1)
    def _finalize():
        conv = acc_ref[...]
        # bf16 intermediate storage (stats below use the exact f32 accumulator).
        conv_ref[...] = conv.astype(conv_ref.dtype)
        # Per-channel partial sums via XLU sublane reductions: a different VLIW
        # slot than the MXU matmul, so this hides under the MXU-bound main loop.
        s = jnp.sum(conv, axis=0, keepdims=True)
        q = jnp.sum(conv * conv, axis=0, keepdims=True)
        # Pack [sum; sumsq; zeros] into one lane-dense (8, cout_pad) block.
        row = jax.lax.broadcasted_iota(jnp.int32, stats_ref.shape, 0)
        stats_ref[...] = jnp.where(row == 0, s, jnp.where(row == 1, q, 0.0))


# ---------------------------------------------------------------------------
# Pass 2: y = conv * scale + shift, ReLU.  Independent per M tile ("parallel").
# ---------------------------------------------------------------------------
def _bn_relu_kernel(conv_ref, scale_ref, shift_ref, o_ref):
    y = conv_ref[...].astype(jnp.float32) * scale_ref[...] + shift_ref[...]
    o_ref[...] = jnp.maximum(y, 0.0).astype(o_ref.dtype)


# ---------------------------------------------------------------------------
# Wrapper glue (plain JAX): bf16 im2col, padding, two pallas_calls, un-padding.
# ---------------------------------------------------------------------------
def _im2col(x, kh, kw, stride, padding, dilation):
    # x: [N, C, H, W] (already bf16) -> patches [N*OH*OW, C*KH*KW] bf16.
    # TODO(synk): implicit in-kernel im2col (index_map over a padded NHWC copy
    # with a KH*KW reduction axis) would remove the ~KH*KW HBM blow-up entirely.
    n, c, h, w = x.shape
    xp = jnp.pad(x, ((0, 0), (0, 0), (padding, padding), (padding, padding)))
    oh = (h + 2 * padding - dilation * (kh - 1) - 1) // stride + 1
    ow = (w + 2 * padding - dilation * (kw - 1) - 1) // stride + 1
    slices = []
    for i in range(kh):
        for j in range(kw):
            hs = i * dilation
            ws = j * dilation
            sl = xp[:, :, hs:hs + (oh - 1) * stride + 1:stride,
                          ws:ws + (ow - 1) * stride + 1:stride]   # [N, C, OH, OW]
            slices.append(sl)
    pat = jnp.stack(slices, axis=0)                      # [KH*KW, N, C, OH, OW]
    pat = jnp.transpose(pat, (1, 3, 4, 2, 0))            # [N, OH, OW, C, KH*KW]
    pat = pat.reshape(n * oh * ow, c * kh * kw)
    return pat, oh, ow


def _pick_tile_k(k_pad, max_tk=512):
    # Largest multiple of 128 (<= max_tk) that divides k_pad -> lane-dense K tiles
    # that feed >=256 K per MXU pass when the layer allows it.
    best = _LANE
    t = _LANE
    while t <= min(k_pad, max_tk):
        if k_pad % t == 0:
            best = t
        t += _LANE
    return best


def bn_conv2d(x, weight, gamma, beta, *, stride=1, padding=1, dilation=1,
              tile_m=1024):
    """x: [N, Cin, H, W] f32, weight: [Cout, Cin, KH, KW]; returns NCHW f32."""
    n, cin, h, w = x.shape
    cout, _, kh, kw = weight.shape

    # bf16-first im2col: the big patches matrix is materialized once, in bf16.
    patches, oh, ow = _im2col(x.astype(jnp.bfloat16), kh, kw, stride, padding,
                              dilation)                             # [M, K] bf16
    m, k = patches.shape

    # Lane-dense padding.  Cout -> 256-multiples when >128 (v6e/v7x 256-wide MXU).
    k_pad = _round_up(k, _LANE)
    cout_pad = _LANE if cout <= _LANE else _round_up(cout, 2 * _LANE)
    tile_k = _pick_tile_k(k_pad)

    # tile_m: multiple of 16 (bf16 sublane packing), clamped to M and to VMEM.
    tile_m = max(_SUBLANE_BF16, (tile_m // _SUBLANE_BF16) * _SUBLANE_BF16)
    tile_m = min(tile_m, _round_up(m, _SUBLANE_BF16))

    def _p1_footprint(tm, tk):
        return (2 * tm * tk * 2            # patches bf16, double buffered
                + 2 * tk * cout_pad * 2    # weights bf16, double buffered
                + 2 * tm * cout_pad * 2    # conv out bf16, double buffered
                + 2 * _STATS_ROWS * cout_pad * 4
                + tm * cout_pad * 4)       # f32 accumulator scratch

    while _p1_footprint(tile_m, tile_k) > _VMEM_BUDGET and tile_m > _SUBLANE_BF16:
        tile_m = max(_SUBLANE_BF16,
                     (tile_m // 2 // _SUBLANE_BF16) * _SUBLANE_BF16)

    m_pad = _round_up(m, tile_m)
    num_m = m_pad // tile_m
    num_k = k_pad // tile_k

    # Pad inputs (patches already bf16 -> single pad copy, no extra cast copy).
    patches_p = jnp.pad(patches, ((0, m_pad - m), (0, k_pad - k)))
    w2 = weight.reshape(cout, cin * kh * kw).astype(jnp.bfloat16).T   # [K, Cout]
    w_p = jnp.pad(w2, ((0, k_pad - k), (0, cout_pad - cout)))
    # Padded channels get gamma=0 / beta=0 so they remain exactly zero.
    g_p = jnp.pad(gamma.astype(jnp.float32), (0, cout_pad - cout))
    b_p = jnp.pad(beta.astype(jnp.float32), (0, cout_pad - cout))

    # TODO(synk): for very large Cout add a "parallel" Cout grid axis instead of
    # keeping the full (tile_k, cout_pad) weight block resident per step.

    # ---- pass 1: conv (bf16 out) + per-M-tile partial stats, M-parallel ------
    flops_p1 = 2 * m_pad * k_pad * cout_pad
    bytes_p1 = (m_pad * k_pad * 2 + k_pad * cout_pad * 2
                + m_pad * cout_pad * 2 + num_m * _STATS_ROWS * cout_pad * 4)
    conv_p, stats_p = pl.pallas_call(
        _conv_stats_kernel,
        grid=(num_m, num_k),
        in_specs=[
            pl.BlockSpec((tile_m, tile_k), lambda i, kk: (i, kk)),
            pl.BlockSpec((tile_k, cout_pad), lambda i, kk: (kk, 0)),
        ],
        out_specs=[
            pl.BlockSpec((tile_m, cout_pad), lambda i, kk: (i, 0)),
            pl.BlockSpec((_STATS_ROWS, cout_pad), lambda i, kk: (i, 0)),
        ],
        out_shape=[
            jax.ShapeDtypeStruct((m_pad, cout_pad), jnp.bfloat16),
            jax.ShapeDtypeStruct((num_m * _STATS_ROWS, cout_pad), jnp.float32),
        ],
        scratch_shapes=[
            pltpu.VMEM((tile_m, cout_pad), jnp.float32),   # f32 conv accumulator
        ],
        compiler_params=pltpu.CompilerParams(
            dimension_semantics=("parallel", "arbitrary"),  # M megacore-shardable
            vmem_limit_bytes=_VMEM_LIMIT),
        cost_estimate=pl.CostEstimate(flops=int(flops_p1), transcendentals=0,
                                      bytes_accessed=int(bytes_p1)),
    )(patches_p, w_p)

    # ---- tiny epilogue (plain JAX, num_m x cout_pad): folded BN affine -------
    stats = stats_p.reshape(num_m, _STATS_ROWS, cout_pad)
    total_sum = jnp.sum(stats[:, 0, :], axis=0)
    total_sq = jnp.sum(stats[:, 1, :], axis=0)
    inv_m = jnp.float32(1.0 / m)                     # real row count (padding = 0)
    mean = total_sum * inv_m
    var = jnp.maximum(total_sq * inv_m - mean * mean, 0.0)   # clamp: E[x^2]-E[x]^2
    inv_std = jax.lax.rsqrt(var + BN_EPS)
    scale = g_p * inv_std
    shift = b_p - mean * scale
    scale2 = scale.reshape(1, cout_pad)
    shift2 = shift.reshape(1, cout_pad)

    # ---- pass 2: normalize (folded affine) + ReLU, big mem-bound tiles -------
    tile_m2 = tile_m
    for f in range(num_m, 0, -1):
        cand = tile_m * f
        if num_m % f == 0 and cand <= 2048 and 12 * cand * cout_pad <= _VMEM_BUDGET:
            tile_m2 = cand
            break
    num_m2 = m_pad // tile_m2

    flops_p2 = 3 * m_pad * cout_pad
    bytes_p2 = m_pad * cout_pad * 2 + m_pad * cout_pad * 4 + 2 * cout_pad * 4
    out_p = pl.pallas_call(
        _bn_relu_kernel,
        grid=(num_m2,),
        in_specs=[
            pl.BlockSpec((tile_m2, cout_pad), lambda i: (i, 0)),
            pl.BlockSpec((1, cout_pad), lambda i: (0, 0)),
            pl.BlockSpec((1, cout_pad), lambda i: (0, 0)),
        ],
        out_specs=pl.BlockSpec((tile_m2, cout_pad), lambda i: (i, 0)),
        out_shape=jax.ShapeDtypeStruct((m_pad, cout_pad), jnp.float32),
        compiler_params=pltpu.CompilerParams(
            dimension_semantics=("parallel",),        # megacore-shardable on v7x
            vmem_limit_bytes=_VMEM_LIMIT),
        cost_estimate=pl.CostEstimate(flops=int(flops_p2), transcendentals=0,
                                      bytes_accessed=int(bytes_p2)),
    )(conv_p, scale2, shift2)

    # Strip padding (padded rows/channels are not read), fold [M, Cout] to NCHW.
    out2d = out_p[:m, :cout]
    out = out2d.reshape(n, oh, ow, cout)
    # TODO(synk): returning NHWC (or fusing this transpose into the consumer)
    # would save one extra HBM round trip of the output.
    return jnp.transpose(out, (0, 3, 1, 2))


# ---------------------------------------------------------------------------
# Reference (XLA) — conv with the same bf16 inputs / f32 accumulation.
# ---------------------------------------------------------------------------
def _reference(x, weight, gamma, beta, *, stride=1, padding=1, dilation=1):
    conv = jax.lax.conv_general_dilated(
        x.astype(jnp.bfloat16), weight.astype(jnp.bfloat16),
        window_strides=(stride, stride),
        padding=[(padding, padding), (padding, padding)],
        rhs_dilation=(dilation, dilation),
        dimension_numbers=("NCHW", "OIHW", "NCHW"),
        preferred_element_type=jnp.float32)
    mean = jnp.mean(conv, axis=(0, 2, 3), keepdims=True)
    var = jnp.var(conv, axis=(0, 2, 3), keepdims=True)
    y = (conv - mean) * jax.lax.rsqrt(var + BN_EPS)
    y = y * gamma.reshape(1, -1, 1, 1) + beta.reshape(1, -1, 1, 1)
    return jnp.maximum(y, 0.0)


if __name__ == "__main__":
    # BN_Conv2d(in_channels=4, out_channels=8, kernel_size=3, stride=1, padding=1)
    N, CIN, H, W = 2, 4, 16, 16
    COUT, KH, KW = 8, 3, 3
    STRIDE, PAD, DIL = 1, 1, 1

    key = jax.random.PRNGKey(0)
    kx, kw_ = jax.random.split(key)
    x = jax.random.normal(kx, (N, CIN, H, W), dtype=jnp.float32)
    # Conv weight (kaiming-ish scale), bias=False.
    fan_in = CIN * KH * KW
    weight = jax.random.normal(kw_, (COUT, CIN, KH, KW), dtype=jnp.float32) * (2.0 / fan_in) ** 0.5
    # BatchNorm2d default init: weight=1, bias=0 (training-mode batch statistics).
    gamma = jnp.ones((COUT,), dtype=jnp.float32)
    beta = jnp.zeros((COUT,), dtype=jnp.float32)

    # tile_m=128 -> 4 M-tiles: exercises the parallel M axis + partial-stats
    # reduction and the larger pass-2 tile path (tile_m2 = 512).
    out = bn_conv2d(x, weight, gamma, beta,
                    stride=STRIDE, padding=PAD, dilation=DIL, tile_m=128)
    out = jax.block_until_ready(out)

    ref = _reference(x, weight, gamma, beta, stride=STRIDE, padding=PAD, dilation=DIL)
    assert out.shape == (N, COUT, H, W), out.shape
    # bf16 MXU inputs + bf16 conv intermediate -> compare against the bf16-input
    # reference with a matching tolerance.
    max_diff = float(jnp.max(jnp.abs(out - ref)))
    assert jnp.allclose(out, ref, atol=3e-2, rtol=2e-2), \
        f"mismatch vs reference (max |diff| = {max_diff})"

    print("KERNEL_OK")
</pallas_src>

<mosaic_0001>
module attributes {stable_mosaic.version = 11 : i64} {
  func.func @_conv_stats_kernel(%arg0: i32, %arg1: i32, %arg2: memref<128x128xbf16, #tpu.memory_space<vmem>>, %arg3: memref<128x128xbf16, #tpu.memory_space<vmem>>, %arg4: memref<128x128xbf16, #tpu.memory_space<vmem>>, %arg5: memref<8x128xf32, #tpu.memory_space<vmem>>, %arg6: memref<128x128xf32, #tpu.memory_space<vmem>>) attributes {dimension_semantics = [#tpu.dimension_semantics<parallel>, #tpu.dimension_semantics<arbitrary>], iteration_bounds = array<i64: 4, 1>, scalar_prefetch = 0 : i64, scratch_operands = 1 : i64, tpu.core_type = #tpu.core_type<tc>, window_params = [{transform_indices = @transform_0, window_bounds = array<i64: 128, 128>}, {transform_indices = @transform_1, window_bounds = array<i64: 128, 128>}, {transform_indices = @transform_2, window_bounds = array<i64: 128, 128>}, {transform_indices = @transform_3, window_bounds = array<i64: 8, 128>}]} {
    %c0_i32 = arith.constant 0 : i32
    %0 = arith.cmpi eq, %arg1, %c0_i32 : i32
    %1 = arith.extui %0 : i1 to i32
    %c0_i32_0 = arith.constant 0 : i32
    %2 = arith.cmpi ne, %1, %c0_i32_0 : i32
    scf.if %2 {
      %cst_10 = arith.constant 0.000000e+00 : f32
      %12 = vector.broadcast %cst_10 : f32 to vector<128x128xf32>
      %c0_11 = arith.constant 0 : index
      %c0_12 = arith.constant 0 : index
      %13 = vector.load %arg6[%c0_11, %c0_12] : memref<128x128xf32, #tpu.memory_space<vmem>>, vector<128x128xf32>
      tpu.vector_store %arg6[%c0_11, %c0_12], %12 {strides = array<i32>} : memref<128x128xf32, #tpu.memory_space<vmem>>, vector<128x128xf32>,
    } else {
    }
    %c0 = arith.constant 0 : index
    %c0_1 = arith.constant 0 : index
    %3 = vector.load %arg6[%c0, %c0_1] : memref<128x128xf32, #tpu.memory_space<vmem>>, vector<128x128xf32>
    %c0_2 = arith.constant 0 : index
    %c0_3 = arith.constant 0 : index
    %4 = vector.load %arg2[%c0_2, %c0_3] : memref<128x128xbf16, #tpu.memory_space<vmem>>, vector<128x128xbf16>
    %c0_4 = arith.constant 0 : index
    %c0_5 = arith.constant 0 : index
    %5 = vector.load %arg3[%c0_4, %c0_5] : memref<128x128xbf16, #tpu.memory_space<vmem>>, vector<128x128xbf16>
    %cst = arith.constant dense<0.000000e+00> : vector<128x128xf32>
    %6 = tpu.matmul %4, %5, %cst {dimension_numbers = #tpu.dot_dimension_numbers<[1], [0], [0], [1], [0, 0, 1, 1], [], []>} : vector<128x128xbf16>, vector<128x128xbf16>, vector<128x128xf32> -> vector<128x128xf32>
    %7 = arith.addf %3, %6 : vector<128x128xf32>
    %c0_6 = arith.constant 0 : index
    %c0_7 = arith.constant 0 : index
    %8 = vector.load %arg6[%c0_6, %c0_7] : memref<128x128xf32, #tpu.memory_space<vmem>>, vector<128x128xf32>
    tpu.vector_store %arg6[%c0_6, %c0_7], %7 {strides = array<i32>} : memref<128x128xf32, #tpu.memory_space<vmem>>, vector<128x128xf32>,
    %c0_i32_8 = arith.constant 0 : i32
    %9 = arith.cmpi eq, %arg1, %c0_i32_8 : i32
    %10 = arith.extui %9 : i1 to i32
    %c0_i32_9 = arith.constant 0 : i32
    %11 = arith.cmpi ne, %10, %c0_i32_9 : i32
    scf.if %11 {
      %c0_10 = arith.constant 0 : index
      %c0_11 = arith.constant 0 : index
      %12 = vector.load %arg6[%c0_10, %c0_11] : memref<128x128xf32, #tpu.memory_space<vmem>>, vector<128x128xf32>
      %13 = arith.truncf %12 : vector<128x128xf32> to vector<128x128xbf16>
      %c0_12 = arith.constant 0 : index
      %c0_13 = arith.constant 0 : index
      %14 = vector.load %arg4[%c0_12, %c0_13] : memref<128x128xbf16, #tpu.memory_space<vmem>>, vector<128x128xbf16>
      tpu.vector_store %arg4[%c0_12, %c0_13], %13 {strides = array<i32>} : memref<128x128xbf16, #tpu.memory_space<vmem>>, vector<128x128xbf16>,
      %cst_14 = arith.constant dense<0.000000e+00> : vector<128xf32>
      %15 = vector.multi_reduction <add>, %12, %cst_14 [0] : vector<128x128xf32> to vector<128xf32>
      %16 = vector.shape_cast %15 : vector<128xf32> to vector<1x128xf32>
      %17 = arith.mulf %12, %12 : vector<128x128xf32>
      %cst_15 = arith.constant dense<0.000000e+00> : vector<128xf32>
      %18 = vector.multi_reduction <add>, %17, %cst_15 [0] : vector<128x128xf32> to vector<128xf32>
      %19 = vector.shape_cast %18 : vector<128xf32> to vector<1x128xf32>
      %20 = tpu.iota {dimensions = array<i32: 0>} : vector<8x128xi32>
      %c0_i32_16 = arith.constant 0 : i32
      %21 = vector.broadcast %c0_i32_16 : i32 to vector<8x128xi32>
      %22 = arith.cmpi eq, %20, %21 : vector<8x128xi32>
      %c1_i32 = arith.constant 1 : i32
      %23 = vector.broadcast %c1_i32 : i32 to vector<8x128xi32>
      %24 = arith.cmpi eq, %20, %23 : vector<8x128xi32>
      %cst_17 = arith.constant 0.000000e+00 : f32
      %25 = vector.shape_cast %19 : vector<1x128xf32> to vector<1x128xf32>
      %26 = vector.broadcast %25 : vector<1x128xf32> to vector<8x128xf32>
      %27 = vector.broadcast %cst_17 : f32 to vector<8x128xf32>
      %28 = arith.select %24, %26, %27 : vector<8x128xi1>, vector<8x128xf32>
      %29 = vector.shape_cast %16 : vector<1x128xf32> to vector<1x128xf32>
      %30 = vector.broadcast %29 : vector<1x128xf32> to vector<8x128xf32>
      %31 = arith.select %22, %30, %28 : vector<8x128xi1>, vector<8x128xf32>
      %c0_18 = arith.constant 0 : index
      %c0_19 = arith.constant 0 : index
      %32 = vector.load %arg5[%c0_18, %c0_19] : memref<8x128xf32, #tpu.memory_space<vmem>>, vector<8x128xf32>
      tpu.vector_store %arg5[%c0_18, %c0_19], %31 {strides = array<i32>} : memref<8x128xf32, #tpu.memory_space<vmem>>, vector<8x128xf32>,
    } else {
    }
    return
  }
  func.func @transform_0(%arg0: i32, %arg1: i32) -> (i32, i32) {
    %c0_i32 = arith.constant 0 : i32
    return %arg0, %arg1 : i32, i32
  }
  func.func @transform_1(%arg0: i32, %arg1: i32) -> (i32, i32) {
    %c0_i32 = arith.constant 0 : i32
    %c0_i32_0 = arith.constant 0 : i32
    return %arg1, %c0_i32 : i32, i32
  }
  func.func @transform_2(%arg0: i32, %arg1: i32) -> (i32, i32) {
    %c0_i32 = arith.constant 0 : i32
    %c0_i32_0 = arith.constant 0 : i32
    return %arg0, %c0_i32 : i32, i32
  }
  func.func @transform_3(%arg0: i32, %arg1: i32) -> (i32, i32) {
    %c0_i32 = arith.constant 0 : i32
    %c0_i32_0 = arith.constant 0 : i32
    return %arg0, %c0_i32 : i32, i32
  }
}

</mosaic_0001>

<bundles_post_ra>
// kernel: tpu_custom_call.1
= control target key start
LH: loop header
LB: loop body
LE: loop exit
PB: predicated region body
PF: predicated region fallthrough
CT: control target
= control target key end

     0   :  { %s1450_s0 = inlined_call_operand.hbm [shape: bf16[512,128], index: 0, kind: input, shape index: {}]   ;;  %s1451_s1 = inlined_call_operand.hbm [shape: bf16[128,128], index: 1, kind: input, shape index: {}]   ;;  %s1452_s2 = inlined_call_operand.hbm [shape: bf16[512,128], index: 2, kind: output, shape index: {0}]   ;;  %s1453_s3 = inlined_call_operand.hbm [shape: f32[32,128], index: 3, kind: output, shape index: {1}]  }
   0x1   :  { %1455 = sst [smem:[#allocation15_spill]] %s1451_s1 }
   0x2   :  { %9 = vsyncpa [#allocation4], 0 }
   0x3   :  { %11 = vsyncpa [#allocation4 + $0x1], 0 }
   0x4   :  { %12 = vsyncpa [#allocation7], 0 }
   0x5   :  { %13 = vsyncpa [#allocation5], 0 }
   0x6   :  { %15 = vsyncpa [#allocation5 + $0x1], 0 }
   0x7   :  { %16 = vsyncpa [#allocation10], 0 }
   0x8   :  { %18 = vsyncpa [#allocation10 + $0x1], 0  ;;  %s1229_s12 = smov 0   ;;  %s1231_s13 = smov 0  }
   0x9   :  { %s1233_s14 = smov 0   ;;  %s1235_s15 = smov 0  }
   0xa   :  { %s1237_s16 = smov 0   ;;  %s1239_s17 = smov 0  }
   0xb LB: > { %s769_s18 = sadd.s32 4294967295, %s1202_s17   ;;  %s770_s19 = sadd.s32 4294967294, %s1202_s17   ;;  %s1202_s17 = sphi %s1239_s17, %s24_s17   ;;  %s1198_s16 = sphi %s1237_s16, %s1469_s16   ;;  %s1194_s15 = sphi %s1235_s15, %s1468_s15   ;;  %s1190_s14 = sphi %s1233_s14, %s1467_s14   ;;  %s1186_s13 = sphi %s1231_s13, %s1466_s13   ;;  %s1182_s12 = sphi %s1229_s12, %s1465_s12  }
   0xc   : > { %p58_p0 = scmp.ne.s32.totalorder %s1186_s13, %s1182_s12  ;;  %p1263_p1 = scmp.eq.s32.totalorder %s769_s18, 0 }
   0xd   : > { %p1267_p2 = scmp.eq.s32.totalorder %s769_s18, 3  ;;  %p114_p3 = scmp.eq.s32.totalorder %s770_s19, 3 }
   0xe   : > { %p1273_p4 = por %p1263_p1, %p58_p0  ;;  %p771_p5 = scmp.ge.s32.totalorder %s1202_s17, 1 }
   0xf   : > { %p1278_p6 = por %p114_p3, %p58_p0  ;;  %p147_p7 = scmp.lt.s32.totalorder %s1202_s17, 5 }
  0x10   : > { %s1460_s1 = sld [smem:[#allocation15_spill]]  ;;  %s1204_s28 = smov [#allocation6]  }
  0x11   : > { %p1286_p8 = pnand %p771_p5, %p147_p7  ;;  %s163_s29 = sshll.u32 %s1204_s28, 4  ;;  %s164_s29 = int_to_ptr.vmem [resolvable:$true] %s163_s29 }
  0x12   : > { %s1454_s30 = smov 64   ;;  %s1206_s4 = smov 4  }
  0x13   : > { %p952_p9 = pneg %p1286_p8  ;;  %s36_s5 = sadd.s32 1, %s1198_s16 }
  0x14   : > { %p38_p11 = scmp.ge.s32.totalorder %s36_s5, 4  ;;  %s45_s6 = sadd.s32 1, %s1190_s14 }
  0x15   : > { %p953_p10 = pnand %p952_p9, %p1263_p1  ;;  %p52_p12 = scmp.ne.s32.totalorder %s1190_s14, %s1186_s13 }
  0x16   : > { %s161_s26 = sshll.u32 %s1460_s1, 4  ;;  %p53_p13 = scmp.eq.s32.totalorder %s1202_s17, 0  ;;  %s162_s26 = int_to_ptr.hbm [resolvable:$true] %s161_s26 }
  0x17   : > { %955 = dma.hbm_to_vmem [thread:$0]  (!%p953_p10), %s162_s26, 1024, %s164_s29, [#allocation7], %s1454_s30, %s1454_s30, %s1206_s4  }
  0x18   : > { %s1471_s5 = smov (%p38_p11, %s36_s5), 0  ;;  %p1304_p0 = por %p53_p13, %p52_p12 }
  0x19   : > { %p1310_p3 = por %p1267_p2, %p52_p12  ;;  %s40_s9 = ssub.s32 %s1198_s16, %s1471_s5 }
  0x1a   : > { %p968_p5 = scmp.lt.s32.totalorder %s1202_s17, 4  ;;  %p43_p7 = scmp.eq.s32.totalorder %s40_s9, 0 }
  0x1b   : > { %s177_s10 = sand.u32 1, %s1190_s14   ;;  %s853_s19 = sshll.u32 %s1198_s16, 6 }
  0x1c   : > { %s774_s11 = sshll.u32 %s177_s10, 6  ;;  %s187_s26 = scalar_lea.hbm %s1450_s0, %s853_s19 }
  0x1d   : > { %s1319_s18 = scalar_select %p43_p7, %s1190_s14, %s45_s6  }
  0x1e   : > { %s181_s28 = scalar_lea.vmem [#allocation3], %s774_s11  ;;  %s188_s21 = sshll.u32 %s187_s26, 4  ;;  %s189_s21 = int_to_ptr.hbm [resolvable:$true] %s188_s21 }
  0x1f   : > { %s190_s29 = sshll.u32 %s181_s28, 4  ;;  %p957_p2 = pnand %p968_p5, %p1304_p0  ;;  %s191_s29 = int_to_ptr.vmem [resolvable:$true] %s190_s29 }
  0x20   : > { %s178_s30 = scalar_lea.sflag [#allocation4], %s177_s10  ;;  %s1464_s1 = smov 64  }
  0x21   : > { %959 = dma.hbm_to_vmem [thread:$0]  (!%p957_p2), %s189_s21, 1024, %s191_s29, %s178_s30, %s1464_s1, %s1464_s1, %s1206_s4  }
  0x22   : > { %202 = sbr.rel (%p1286_p8) target bundleno = 269 (0x10d), region = 28  ;;  %s1333_s6 = sand.u32 (!%p1286_p8), 1, %s1186_s13  }
  0x23   : > { %s778_s9 = sshll.u32 (!%p1286_p8), %s1333_s6, 6  ;;  %s205_s11 = scalar_lea.sflag (!%p1286_p8), [#allocation4], %s1333_s6 }
  0x24   : > { %s1339_s7 = scalar_lea.vmem (!%p1286_p8), [#allocation3], %s778_s9 }
  0x27   : > { %1165 = dma.done.wait (%p1273_p4), %s205_s11, 1024  }
  0x28   : > { %1167 = vsyncadd (%p1273_p4), %s205_s11, 4294966272 }
  0x29   : > { %1169 = dma.done.wait (%p1263_p1), [#allocation7], 1024  }
  0x2a   : > { %1171 = vsyncadd (%p1263_p1), [#allocation7], 4294966272  ;;  %v869_v0 = vld [vmem:[#allocation6 + $0x38] sm:$0xff]  ;;  %v868_v1 = vld [vmem:[#allocation6 + $0x30] sm:$0xff]  ;;  %s1361_s1 = scalar_lea.vmem [#allocation8], %s778_s9  ;;  %s870_s20 = sshll.u32 %s1194_s15, 6 }
  0x2b   : > { %409 = vmatpush.bf16.msra.mxu0 %v869_v0  ;;  %918 = vmatpush.bf16.msra.mxu1 %v869_v0  ;;  %v867_v2 = vld [vmem:[#allocation6 + $0x28] sm:$0xff]  ;;  %v866_v3 = vld [vmem:[#allocation6 + $0x20] sm:$0xff]  ;;  %v865_v4 = vld [vmem:[#allocation6 + $0x18] sm:$0xff]  ;;  %s623_s30 = scalar_lea.hbm %s1452_s2, %s870_s20  ;;  %s624_s4 = sshll.u32 %s1361_s1, 4  ;;  %s1384_s4 = int_to_ptr.vmem [resolvable:$true] %s624_s4 }
  0x2c   : > { %919 = vmatpush.bf16.msra.mxu2 %v869_v0  ;;  %920 = vmatpush.bf16.msra.mxu3 %v869_v0  ;;  %v864_v5 = vld [vmem:[#allocation6 + $0x10] sm:$0xff]  ;;  %v863_v6 = vld [vmem:[#allocation6 + $0x8] sm:$0xff]  ;;  %v862_v7 = vld [vmem:[#allocation6] sm:$0xff]  ;;  %s626_s10 = sshll.u32 %s623_s30, 4  ;;  %s607_s19 = scalar_lea.sflag [#allocation5], %s1333_s6  ;;  %s627_s10 = int_to_ptr.hbm [resolvable:$true] %s626_s10 }
  0x2d   : > { %v854_v8 = vld [vmem:[%s1339_s7] sm:$0xff]  ;;  %v856_v9 = vld [vmem:[%s1339_s7 + $0x10] sm:$0xff]  ;;  %v855_v12 = vld [vmem:[%s1339_s7 + $0x8] sm:$0xff]  ;;  %s1098_s24 = sshra.s32 %s627_s10, 4  ;;  %s1104_s29 = scalar_lea.hbm %s1452_s2, 256  ;;  %s1099_s24 = int_to_ptr.hbm [resolvable:$true] %s1098_s24 }
  0x2e   : > { %v858_v10 = vld [vmem:[%s1339_s7 + $0x20] sm:$0xff]  ;;  %v860_v11 = vld [vmem:[%s1339_s7 + $0x30] sm:$0xff]  ;;  %v857_v13 = vld [vmem:[%s1339_s7 + $0x18] sm:$0xff]  ;;  %s1100_s25 = scalar_lea.hbm %s1099_s24, 64  ;;  %p1105_p9 = scmp.lt.s32.totalorder %s1099_s24, %s1452_s2 }
  0x2f   : > { %410 = vmatpush.bf16.msra.mxu0 %v868_v1  ;;  %921 = vmatpush.bf16.msra.mxu1 %v868_v1  ;;  %v859_v14 = vld [vmem:[%s1339_s7 + $0x28] sm:$0xff]  ;;  %v861_v15 = vld [vmem:[%s1339_s7 + $0x38] sm:$0xff]  ;;  %p1101_p1 = scmp.ne.s32.totalorder %s1099_s24, %s1100_s25  ;;  %p1106_p10 = scmp.lt.s32.totalorder %s1104_s29, %s1100_s25 }
  0x30   : > { %922 = vmatpush.bf16.msra.mxu2 %v868_v1  ;;  %923 = vmatpush.bf16.msra.mxu3 %v868_v1 }
  0x31   : > { %p1102_p4 = pnand %p1101_p1, %p1310_p3  ;;  %p1107_p11 = por %p1106_p10, %p1105_p9 }
  0x33   : > { %411 = vmatpush.bf16.msra.mxu0 %v867_v2  ;;  %924 = vmatpush.bf16.msra.mxu1 %v867_v2  ;;  %p1103_p8 = pneg %p1102_p4 }
  0x34   : > { %925 = vmatpush.bf16.msra.mxu2 %v867_v2  ;;  %926 = vmatpush.bf16.msra.mxu3 %v867_v2 }
  0x35   : > { %p1108_p12 = pnand %p1107_p11, %p1103_p8 }
  0x37   : > { %412 = vmatpush.bf16.msra.mxu0 %v866_v3  ;;  %927 = vmatpush.bf16.msra.mxu1 %v866_v3 }
  0x38   : > { %928 = vmatpush.bf16.msra.mxu2 %v866_v3  ;;  %929 = vmatpush.bf16.msra.mxu3 %v866_v3 }
  0x3b   : > { %413 = vmatpush.bf16.msra.mxu0 %v865_v4  ;;  %930 = vmatpush.bf16.msra.mxu1 %v865_v4 }
  0x3c   : > { %931 = vmatpush.bf16.msra.mxu2 %v865_v4  ;;  %932 = vmatpush.bf16.msra.mxu3 %v865_v4 }
  0x3f   : > { %414 = vmatpush.bf16.msra.mxu0 %v864_v5  ;;  %933 = vmatpush.bf16.msra.mxu1 %v864_v5 }
  0x40   : > { %934 = vmatpush.bf16.msra.mxu2 %v864_v5  ;;  %935 = vmatpush.bf16.msra.mxu3 %v864_v5 }
  0x43   : > { %415 = vmatpush.bf16.msra.mxu0 %v863_v6  ;;  %936 = vmatpush.bf16.msra.mxu1 %v863_v6 }
  0x44   : > { %937 = vmatpush.bf16.msra.mxu2 %v863_v6  ;;  %938 = vmatpush.bf16.msra.mxu3 %v863_v6 }
  0x47   : > { %416 = vmatpush.bf16.msra.mxu0 %v862_v7  ;;  %939 = vmatpush.bf16.msra.mxu1 %v862_v7 }
  0x48   : > { %940 = vmatpush.bf16.msra.mxu2 %v862_v7  ;;  %941 = vmatpush.bf16.msra.mxu3 %v862_v7 }
  0x4a   : > { %417 = vmatmul.bf16.vlgmr.msra.gmra.mxu0 %v854_v8  ;;  %427 = vmatmul.bf16.vlgmr.msra.gmra.mxu1 %v856_v9 }
  0x4b   : > { %437 = vmatmul.bf16.vlgmr.msra.gmra.mxu2 %v858_v10  ;;  %447 = vmatmul.bf16.vlgmr.msra.gmra.mxu3 %v860_v11 }
  0x5a   : > { %422 = vmatmul.bf16.gmra.mxu0 %v855_v12  ;;  %432 = vmatmul.bf16.gmra.mxu1 %v857_v13 }
  0x5b   : > { %442 = vmatmul.bf16.gmra.mxu2 %v859_v14  ;;  %452 = vmatmul.bf16.gmra.mxu3 %v861_v15 }
  0xc7   : > { %v418_v16 = vpop.f32.mrf.mxu0  ;;  %v428_v17 = vpop.f32.mrf.mxu1 }
  0xc8   : > { %v562_v31 = vmul.f32 %v418_v16, %v418_v16  ;;  %v566_v45 = vmul.f32 %v428_v17, %v428_v17 }
  0xce   : > { %v438_v18 = vpop.f32.mrf.mxu2  ;;  %v1357_v19 = vpop.f32.mrf.mxu3 }
  0xcf   : > { %v420_v20 = vpop.f32.mrf.mxu0  ;;  %v430_v21 = vpop.f32.mrf.mxu1  ;;  %v570_v61 = vmul.f32 %v438_v18, %v438_v18 }
  0xd0   : > { %v874_v22 = vpack.c.bf16 %v420_v20, %v418_v16  ;;  %v884_v23 = vpack.c.bf16 %v430_v21, %v428_v17  ;;  %v563_v30 = vmul.f32 %v420_v20, %v420_v20  ;;  %v541_v33 = vadd.f32 %v420_v20, %v418_v16 }
  0xd1   : > { %v567_v48 = vmul.f32 %v430_v21, %v430_v21 }
  0xd2   : > { %875 = vst [vmem:[%s1361_s1] sm:$0xff] %v874_v22   ;;  %v578_v34 = vadd.f32 %v563_v30, %v562_v31 }
  0xd3   : > { %912 = vst [vmem:[%s1361_s1 + $0x10] sm:$0xff] %v884_v23  }
  0xd6   : > { %v1365_v24 = vpop.f32.mrf.mxu2  ;;  %v1367_v25 = vpop.f32.mrf.mxu3 }
  0xd7   : > { %v423_v26 = vpop.f32.mrf.mxu0  ;;  %v433_v27 = vpop.f32.mrf.mxu1  ;;  %v894_v28 = vpack.c.bf16 %v1365_v24, %v438_v18  ;;  %v904_v29 = vpack.c.bf16 %v1367_v25, %v1357_v19 }
  0xd8   : > { %v564_v32 = vmul.f32 %v423_v26, %v423_v26  ;;  %v542_v35 = vadd.f32 %v541_v33, %v423_v26  ;;  %v568_v51 = vmul.f32 %v433_v27, %v433_v27 }
  0xd9   : > { %914 = vst [vmem:[%s1361_s1 + $0x20] sm:$0xff] %v894_v28  }
  0xda   : > { %916 = vst [vmem:[%s1361_s1 + $0x30] sm:$0xff] %v904_v29   ;;  %v579_v38 = vadd.f32 %v578_v34, %v564_v32 }
  0xde   : > { %v443_v36 = vpop.f32.mrf.mxu2  ;;  %v1374_v37 = vpop.f32.mrf.mxu3 }
  0xdf   : > { %v425_v39 = vpop.f32.mrf.mxu0  ;;  %v435_v40 = vpop.f32.mrf.mxu1 }
  0xe0   : > { %v879_v41 = vpack.c.bf16 %v425_v39, %v423_v26  ;;  %v543_v42 = vadd.f32 %v542_v35, %v425_v39  ;;  %v565_v43 = vmul.f32 %v425_v39, %v425_v39  ;;  %v889_v44 = vpack.c.bf16 %v435_v40, %v433_v27 }
  0xe1   : > { %v569_v59 = vmul.f32 %v435_v40, %v435_v40 }
  0xe2   : > { %911 = vst [vmem:[%s1361_s1 + $0x8] sm:$0xff] %v879_v41   ;;  %v544_v46 = vadd.f32 %v543_v42, %v428_v17  ;;  %v580_v47 = vadd.f32 %v579_v38, %v565_v43 }
  0xe3   : > { %913 = vst [vmem:[%s1361_s1 + $0x18] sm:$0xff] %v889_v44  }
  0xe4   : > { %v581_v49 = vadd.f32 %v580_v47, %v566_v45  ;;  %v545_v50 = vadd.f32 %v544_v46, %v430_v21 }
  0xe6   : > { %v546_v52 = vadd.f32 %v545_v50, %v433_v27  ;;  %v582_v53 = vadd.f32 %v581_v49, %v567_v48  ;;  %v445_v54 = vpop.f32.mrf.mxu2  ;;  %v455_v55 = vpop.f32.mrf.mxu3 }
  0xe7   : > { %v899_v56 = vpack.c.bf16 %v445_v54, %v443_v36  ;;  %v909_v57 = vpack.c.bf16 %v455_v55, %v1374_v37 }
  0xe8   : > { %v547_v58 = vadd.f32 %v546_v52, %v435_v40  ;;  %v583_v60 = vadd.f32 %v582_v53, %v568_v51 }
  0xe9   : > { %915 = vst [vmem:[%s1361_s1 + $0x28] sm:$0xff] %v899_v56  }
  0xea   : > { %v548_v62 = vadd.f32 %v547_v58, %v438_v18  ;;  %v584_v63 = vadd.f32 %v583_v60, %v569_v59  ;;  %917 = vst [vmem:[%s1361_s1 + $0x38] sm:$0xff] %v909_v57  }
  0xeb   : > { %1111 = shalt.err (!%p1108_p12)
}
  0xec   : > { %s1207_s11 = smov 64   ;;  %s1208_s7 = smov 4   ;;  %v571_v0 = vmul.f32 %v1365_v24, %v1365_v24  ;;  %v585_v1 = vadd.f32 %v584_v63, %v570_v61  ;;  %v549_v2 = vadd.f32 %v548_v62, %v1365_v24  ;;  %v572_v4 = vmul.f32 %v443_v36, %v443_v36 }
  0xed   : > { %948 = dma.vmem_to_hbm [thread:$0]  (%p1310_p3), %s1384_s4, 1024, %s627_s10, %s607_s19, %s1207_s11, %s1207_s11, %s1208_s7   ;;  %v573_v8 = vmul.f32 %v445_v54, %v445_v54  ;;  %v574_v9 = vmul.f32 %v1357_v19, %v1357_v19  ;;  %v575_v12 = vmul.f32 %v1367_v25, %v1367_v25  ;;  %v576_v16 = vmul.f32 %v1374_v37, %v1374_v37 }
  0xee   : > { %v550_v3 = vadd.f32 %v549_v2, %v443_v36  ;;  %v586_v5 = vadd.f32 %v585_v1, %v571_v0  ;;  %v577_v21 = vmul.f32 %v455_v55, %v455_v55  ;;  %v599_v26 = vlaneseq  ;;  %s781_s1 = sshll.u32 %s1333_s6, 3  ;;  %s850_s20 = sshll.u32 %s1194_s15, 3 }
  0xef   : > { %s639_s30 = scalar_lea.hbm %s1453_s3, %s850_s20  ;;  %s241_s4 = scalar_lea.vmem [#allocation9], %s781_s1 }
  0xf0   : > { %v587_v6 = vadd.f32 %v586_v5, %v572_v4  ;;  %v551_v7 = vadd.f32 %v550_v3, %v445_v54  ;;  %v600_v30 = vshrl.u32 %v599_v26, 7  ;;  %s641_s10 = sshll.u32 %s241_s4, 4  ;;  %s643_s19 = sshll.u32 %s639_s30, 4  ;;  %s642_s10 = int_to_ptr.vmem [resolvable:$true] %s641_s10  ;;  %s644_s19 = int_to_ptr.hbm [resolvable:$true] %s643_s19 }
  0xf1   : > { %s612_s15 = scalar_lea.sflag [#allocation10], %s1333_s6  ;;  %s1126_s24 = sshra.s32 %s644_s19, 4  ;;  %s1127_s24 = int_to_ptr.hbm [resolvable:$true] %s1126_s24 }
  0xf2   : > { %v552_v10 = vadd.f32 %v551_v7, %v1357_v19  ;;  %v588_v11 = vadd.f32 %v587_v6, %v573_v8  ;;  %vm602_vm0 = vcmp.eq.s32.totalorder %v600_v30, 1  ;;  %vm601_vm1 = vcmp.eq.s32.totalorder %v600_v30, 0  ;;  %s1128_s25 = scalar_lea.hbm %s1127_s24, 8  ;;  %s1132_s29 = scalar_lea.hbm %s1453_s3, 32 }
  0xf3   : > { %p1129_p13 = scmp.ne.s32.totalorder %s1127_s24, %s1128_s25  ;;  %p1133_p7 = scmp.lt.s32.totalorder %s1127_s24, %s1453_s3 }
  0xf4   : > { %v589_v13 = vadd.f32 %v588_v11, %v574_v9  ;;  %v553_v14 = vadd.f32 %v552_v10, %v1367_v25  ;;  %p1134_p2 = scmp.lt.s32.totalorder %s1132_s29, %s1128_s25 }
  0xf5   : > { %p1130_p0 = pnand %p1129_p13, %p1310_p3 }
  0xf6   : > { %v554_v15 = vadd.f32 %v553_v14, %v1374_v37  ;;  %v590_v17 = vadd.f32 %v589_v13, %v575_v12  ;;  %p1135_p1 = por %p1134_p2, %p1133_p7 }
  0xf7   : > { %p1131_p5 = pneg %p1130_p0 }
  0xf8   : > { %v591_v18 = vadd.f32 %v590_v17, %v576_v16  ;;  %v555_v20 = vadd.f32 %v554_v15, %v455_v55 }
  0xf9   : > { %p1136_p4 = pnand %p1135_p1, %p1131_p5 }
  0xfa   : > { %v556_v22 = vrot.slane %v555_v20, 4  ;;  %v592_v19 = vadd.f32 %v591_v18, %v577_v21 }
  0xfc   : > { %v557_v23 = vadd.f32 %v556_v22, %v555_v20  ;;  %v593_v24 = vrot.slane %v592_v19, 4 }
  0xfe   : > { %v558_v27 = vrot.slane %v557_v23, 2  ;;  %v594_v28 = vadd.f32 %v593_v24, %v592_v19 }
 0x100   : > { %v559_v29 = vadd.f32 %v558_v27, %v557_v23  ;;  %v595_v25 = vrot.slane %v594_v28, 2 }
 0x102   : > { %v596_v31 = vadd.f32 %v595_v25, %v594_v28  ;;  %v560_v32 = vrot.slane %v559_v29, 1 }
 0x104   : > { %v597_v33 = vrot.slane %v596_v31, 1  ;;  %v561_v35 = vadd.f32 %v560_v32, %v559_v29 }
 0x106   : > { %v598_v34 = vadd.f32 %v597_v33, %v596_v31 }
 0x108   : > { %v603_v36 = vsel %vm602_vm0, %v598_v34, 0.0 }
 0x109   : > { %v604_v37 = vsel %vm601_vm1, %v561_v35, %v603_v36 }
 0x10a   : > { %605 = vst [vmem:[%s241_s4] sm:$0xff] %v604_v37 }
 0x10b   : > { %1139 = shalt.err (!%p1136_p4)
}
 0x10c   : > { %949 = dma.vmem_to_hbm [thread:$0]  (%p1310_p3), %s642_s10, 128, %s644_s19, %s612_s15  }
 0x10d PF: > { %p970_p8 = scmp.ge.s32.totalorder %s1202_s17, 2  ;;  %s655_s6 = sand.u32 1, %s1182_s12  }
 0x10e   : > { %s656_s11 = scalar_lea.sflag [#allocation5], %s655_s6 }
 0x10f   : > { %p961_p9 = pnand %p970_p8, %p1278_p6 }
 0x111   : > { %p962_p10 = pneg %p961_p9 }
 0x113   : > { %1173 = dma.done.wait (%p962_p10), %s656_s11, 1024  }
 0x114   : > { %1175 = vsyncadd (%p962_p10), %s656_s11, 4294966272  ;;  %s666_s7 = scalar_lea.sflag [#allocation10], %s655_s6 }
 0x115   : > { %1177 = dma.done.wait (%p962_p10), %s666_s7, 128  }
 0x116   : > { %1179 = vsyncadd (%p962_p10), %s666_s7, 4294967168  ;;  %s24_s17 = sadd.s32 1, %s1202_s17   ;;  %s1465_s12 = smov %s1186_s13 }
 0x117   : > { %p21_p11 = scmp.ge.s32.totalorder %s24_s17, 6   ;;  %s1466_s13 = smov %s1190_s14 }
 0x118   : > { %s1467_s14 = smov %s1319_s18  ;;  %s1468_s15 = smov %s1198_s16 }
 0x119   : > { %s1469_s16 = smov %s1471_s5  ;;  %23 = sbr.rel (!%p21_p11) target bundleno = 11 (0xb), region = 103 }
 0x11e   :  { %672 = vsyncpa [#allocation4], 1 }
 0x11f   :  { %674 = vsyncpa [#allocation4 + $0x1], 1 }
 0x120   :  { %675 = vsyncpa [#allocation7], 1 }
 0x121   :  { %676 = vsyncpa [#allocation5], 1 }
 0x122   :  { %678 = vsyncpa [#allocation5 + $0x1], 1 }
 0x123   :  { %679 = vsyncpa [#allocation10], 1 }
 0x124   :  { %681 = vsyncpa [#allocation10 + $0x1], 1 }

</bundles_post_ra>
